<compile_context>
chip_gen: v5e
topology: v5e:2x2
jax: 0.10.0
libtpu: 0.0.40
codegen_flags: <defaults>
</compile_context>

<pallas_src>
import functools

import jax
import jax.numpy as jnp
from jax import lax
from jax.experimental import pallas as pl
from jax.experimental.pallas import tpu as pltpu


def _ncc_kernel(*refs, L, TL, with_peaks):
    if with_peaks:
        (x_ref, y_ref, p_ref, r_ref, b_ref,
         sx, sy, sxy, sxx, syy, sp) = refs
    else:
        x_ref, y_ref, r_ref, sx, sy, sxy, sxx, syy = refs
        p_ref = b_ref = sp = None

    l = pl.program_id(1)
    last = pl.num_programs(1) - 1

    @pl.when(l == 0)
    def _():
        zeros = jnp.zeros_like(sx)
        sx[...] = zeros
        sy[...] = zeros
        sxy[...] = zeros
        sxx[...] = zeros
        syy[...] = zeros
        if with_peaks:
            sp[...] = zeros

    x = x_ref[...].astype(jnp.float32)
    y = y_ref[...].astype(jnp.float32)

    # Mask lanes past the true sequence length (last lane tile may be padded).
    lane = lax.broadcasted_iota(jnp.int32, x.shape, dimension=1)
    valid = (l * TL + lane) < L
    x = jnp.where(valid, x, 0.0)
    y = jnp.where(valid, y, 0.0)

    sx[...] += jnp.sum(x, axis=1, keepdims=True)
    sy[...] += jnp.sum(y, axis=1, keepdims=True)
    sxy[...] += jnp.sum(x * y, axis=1, keepdims=True)
    sxx[...] += jnp.sum(x * x, axis=1, keepdims=True)
    syy[...] += jnp.sum(y * y, axis=1, keepdims=True)
    if with_peaks:
        p = jnp.where(valid, p_ref[...].astype(jnp.float32), 0.0)
        sp[...] += jnp.sum(p, axis=1, keepdims=True)

    @pl.when(l == last)
    def _():
        inv_n = jnp.float32(1.0 / L)
        cov = sxy[...] - sx[...] * sy[...] * inv_n
        var_x = sxx[...] - sx[...] * sx[...] * inv_n
        var_y = syy[...] - sy[...] * sy[...] * inv_n
        den = var_x * var_y                      # == (std_x * std_y) ** 2
        r = jnp.where(den > 0.0, cov * lax.rsqrt(den), 0.0)
        r_ref[...] = r
        if with_peaks:
            b_ref[...] = sp[...]


def _choose_tiles(B, L, lane_tile=None):
    # Lane tile: multiple of 128, capped for VMEM (works for v7x's 32 MiB
    # scoped / 64 MiB physical budget: 3 inputs x 2 buffers x 2 MiB = 12 MiB).
    cap = 2048 if lane_tile is None else lane_tile
    if L <= cap:
        TL = L                                   # single lane tile == full row
    else:
        TL = max(128, (cap // 128) * 128)
    # Sublane tile: full batch when small, otherwise a multiple of 8.
    if B <= 8:
        TB = B
    else:
        TB = min(256, 8 * (B // 8))
    return TB, TL


def ncc(x, y, peaks_prob_signal=None, loss_weights=None, lane_tile=None):
    """Pallas implementation of the NCC module's forward pass.

    x, y: [B, L] or [L]; peaks_prob_signal: [B, L] (only used when
    loss_weights is a non-empty dict).  Returns the scalar batch-mean NCC.
    """
    if x.ndim == 1:
        x = x[None, :]
    if y.ndim == 1:
        y = y[None, :]
    assert x.shape == y.shape, "X and Y must be of the same shape"
    B, L = x.shape

    use_weights = bool(loss_weights)
    TB, TL = _choose_tiles(B, L, lane_tile)
    nb, nl = pl.cdiv(B, TB), pl.cdiv(L, TL)

    kernel = functools.partial(_ncc_kernel, L=L, TL=TL, with_peaks=use_weights)

    in_specs = [
        pl.BlockSpec((TB, TL), lambda b, l: (b, l)),
        pl.BlockSpec((TB, TL), lambda b, l: (b, l)),
    ]
    inputs = [x, y]                              # native dtype; cast per tile
    out_shapes = [jax.ShapeDtypeStruct((B, 1), jnp.float32)]
    out_specs = [pl.BlockSpec((TB, 1), lambda b, l: (b, 0))]
    n_scratch = 5
    if use_weights:
        assert peaks_prob_signal is not None
        if peaks_prob_signal.ndim == 1:
            peaks_prob_signal = peaks_prob_signal[None, :]
        in_specs.append(pl.BlockSpec((TB, TL), lambda b, l: (b, l)))
        inputs.append(peaks_prob_signal)
        out_shapes.append(jax.ShapeDtypeStruct((B, 1), jnp.float32))
        out_specs.append(pl.BlockSpec((TB, 1), lambda b, l: (b, 0)))
        n_scratch = 6
    scratch = [pltpu.VMEM((TB, 1), jnp.float32)] * n_scratch

    outs = pl.pallas_call(
        kernel,
        out_shape=out_shapes,
        grid_spec=pltpu.PrefetchScalarGridSpec(
            num_scalar_prefetch=0,
            grid=(nb, nl),
            in_specs=in_specs,
            out_specs=out_specs,
            scratch_shapes=scratch,
        ),
        compiler_params=pltpu.CompilerParams(
            dimension_semantics=("parallel", "arbitrary"),
            vmem_limit_bytes=32 * 1024 * 1024,
        ),
    )(*inputs)

    r = outs[0][:, 0]                            # per-row NCC coefficients
    if use_weights:
        breaths = outs[1][:, 0].astype(jnp.int32)  # trunc toward zero (== .long())
        max_key = max(int(k) for k in loss_weights.keys())
        # TODO(synk): negative loss_weights keys are not representable in the
        # lookup table; they fall back to the 1.0 default like any unseen key.
        table = jnp.array(
            [float(loss_weights.get(i, 1.0)) for i in range(max_key + 1)] + [1.0],
            dtype=jnp.float32,
        )
        idx = jnp.clip(breaths, 0, max_key + 1)
        idx = jnp.where(breaths < 0, max_key + 1, idx)
        r = r * table[idx]
    return jnp.mean(r)


def _ncc_reference(x, y, peaks, loss_weights=None):
    xm = x - jnp.mean(x, axis=1, keepdims=True)
    ym = y - jnp.mean(y, axis=1, keepdims=True)
    cov = jnp.sum(xm * ym, axis=1)
    den = jnp.sqrt(jnp.sum(xm * xm, axis=1)) * jnp.sqrt(jnp.sum(ym * ym, axis=1))
    r = jnp.where(den != 0, cov / den, 0.0)
    if loss_weights:
        breaths = jax.device_get(jnp.sum(peaks, axis=1).astype(jnp.int32))
        w = jnp.array([float(loss_weights.get(int(b), 1.0)) for b in breaths],
                      dtype=jnp.float32)
        r = r * w
    return jnp.mean(r)


if __name__ == "__main__":
    key = jax.random.PRNGKey(0)
    kx, ky, kp = jax.random.split(key, 3)

    # Test 1: unweighted, L not a multiple of the lane tile (exercises the
    # multi-tile accumulation path + lane masking).
    B, L = 6, 300
    x = jax.random.normal(kx, (B, L), dtype=jnp.float32)
    y = 0.3 * x + jax.random.normal(ky, (B, L), dtype=jnp.float32)
    peaks = (jax.random.uniform(kp, (B, L)) > 0.97).astype(jnp.float32)

    out = ncc(x, y, peaks, loss_weights=None, lane_tile=128)
    jax.block_until_ready(out)
    ref = _ncc_reference(x, y, peaks)
    assert jnp.allclose(out, ref, atol=1e-4), (out, ref)

    # Test 2: weighted path (peaks streamed through the same kernel sweep).
    B2, L2 = 4, 256
    kx2, ky2, kp2 = jax.random.split(jax.random.PRNGKey(1), 3)
    x2 = jax.random.normal(kx2, (B2, L2), dtype=jnp.float32)
    y2 = jax.random.normal(ky2, (B2, L2), dtype=jnp.float32)
    peaks2 = (jax.random.uniform(kp2, (B2, L2)) > 0.9).astype(jnp.float32)
    weights = {0: 0.5, 1: 2.0, 2: 1.5, 3: 0.25}

    out2 = ncc(x2, y2, peaks2, loss_weights=weights)
    jax.block_until_ready(out2)
    ref2 = _ncc_reference(x2, y2, peaks2, loss_weights=weights)
    assert jnp.allclose(out2, ref2, atol=1e-4), (out2, ref2)

    print("KERNEL_OK")
</pallas_src>

<mosaic_0001>
module attributes {stable_mosaic.version = 11 : i64} {
  func.func @_ncc_kernel(%arg0: i32, %arg1: i32, %arg2: memref<6x128xf32, #tpu.memory_space<vmem>>, %arg3: memref<6x128xf32, #tpu.memory_space<vmem>>, %arg4: memref<6x1xf32, #tpu.memory_space<vmem>>, %arg5: memref<6x1xf32, #tpu.memory_space<vmem>>, %arg6: memref<6x1xf32, #tpu.memory_space<vmem>>, %arg7: memref<6x1xf32, #tpu.memory_space<vmem>>, %arg8: memref<6x1xf32, #tpu.memory_space<vmem>>, %arg9: memref<6x1xf32, #tpu.memory_space<vmem>>) attributes {dimension_semantics = [#tpu.dimension_semantics<parallel>, #tpu.dimension_semantics<arbitrary>], iteration_bounds = array<i64: 1, 3>, scalar_prefetch = 0 : i64, scratch_operands = 5 : i64, tpu.core_type = #tpu.core_type<tc>, window_params = [{transform_indices = @transform_0, window_bounds = array<i64: 6, 128>}, {transform_indices = @transform_1, window_bounds = array<i64: 6, 128>}, {transform_indices = @transform_2, window_bounds = array<i64: 6, 1>}]} {
    %c0_i32 = arith.constant 0 : i32
    %0 = arith.cmpi eq, %arg1, %c0_i32 : i32
    %1 = arith.extui %0 : i1 to i32
    %c0_i32_0 = arith.constant 0 : i32
    %2 = arith.cmpi ne, %1, %c0_i32_0 : i32
    scf.if %2 {
      %cst_31 = arith.constant 0.000000e+00 : f32
      %46 = vector.broadcast %cst_31 : f32 to vector<6x1xf32>
      %c0_32 = arith.constant 0 : index
      %c0_33 = arith.constant 0 : index
      %47 = vector.load %arg5[%c0_32, %c0_33] : memref<6x1xf32, #tpu.memory_space<vmem>>, vector<6x1xf32>
      tpu.vector_store %arg5[%c0_32, %c0_33], %46 {strides = array<i32>} : memref<6x1xf32, #tpu.memory_space<vmem>>, vector<6x1xf32>,
      %c0_34 = arith.constant 0 : index
      %c0_35 = arith.constant 0 : index
      %48 = vector.load %arg6[%c0_34, %c0_35] : memref<6x1xf32, #tpu.memory_space<vmem>>, vector<6x1xf32>
      tpu.vector_store %arg6[%c0_34, %c0_35], %46 {strides = array<i32>} : memref<6x1xf32, #tpu.memory_space<vmem>>, vector<6x1xf32>,
      %c0_36 = arith.constant 0 : index
      %c0_37 = arith.constant 0 : index
      %49 = vector.load %arg7[%c0_36, %c0_37] : memref<6x1xf32, #tpu.memory_space<vmem>>, vector<6x1xf32>
      tpu.vector_store %arg7[%c0_36, %c0_37], %46 {strides = array<i32>} : memref<6x1xf32, #tpu.memory_space<vmem>>, vector<6x1xf32>,
      %c0_38 = arith.constant 0 : index
      %c0_39 = arith.constant 0 : index
      %50 = vector.load %arg8[%c0_38, %c0_39] : memref<6x1xf32, #tpu.memory_space<vmem>>, vector<6x1xf32>
      tpu.vector_store %arg8[%c0_38, %c0_39], %46 {strides = array<i32>} : memref<6x1xf32, #tpu.memory_space<vmem>>, vector<6x1xf32>,
      %c0_40 = arith.constant 0 : index
      %c0_41 = arith.constant 0 : index
      %51 = vector.load %arg9[%c0_40, %c0_41] : memref<6x1xf32, #tpu.memory_space<vmem>>, vector<6x1xf32>
      tpu.vector_store %arg9[%c0_40, %c0_41], %46 {strides = array<i32>} : memref<6x1xf32, #tpu.memory_space<vmem>>, vector<6x1xf32>,
    } else {
    }
    %c0 = arith.constant 0 : index
    %c0_1 = arith.constant 0 : index
    %3 = vector.load %arg2[%c0, %c0_1] : memref<6x128xf32, #tpu.memory_space<vmem>>, vector<6x128xf32>
    %c0_2 = arith.constant 0 : index
    %c0_3 = arith.constant 0 : index
    %4 = vector.load %arg3[%c0_2, %c0_3] : memref<6x128xf32, #tpu.memory_space<vmem>>, vector<6x128xf32>
    %5 = tpu.iota {dimensions = array<i32: 1>} : vector<6x128xi32>
    %c128_i32 = arith.constant 128 : i32
    %6 = arith.muli %arg1, %c128_i32 : i32
    %7 = vector.broadcast %6 : i32 to vector<6x128xi32>
    %8 = arith.addi %7, %5 : vector<6x128xi32>
    %c300_i32 = arith.constant 300 : i32
    %9 = vector.broadcast %c300_i32 : i32 to vector<6x128xi32>
    %10 = arith.cmpi slt, %8, %9 : vector<6x128xi32>
    %cst = arith.constant 0.000000e+00 : f32
    %11 = vector.broadcast %cst : f32 to vector<6x128xf32>
    %12 = arith.select %10, %3, %11 : vector<6x128xi1>, vector<6x128xf32>
    %cst_4 = arith.constant 0.000000e+00 : f32
    %13 = vector.broadcast %cst_4 : f32 to vector<6x128xf32>
    %14 = arith.select %10, %4, %13 : vector<6x128xi1>, vector<6x128xf32>
    %c0_5 = arith.constant 0 : index
    %c0_6 = arith.constant 0 : index
    %15 = vector.load %arg5[%c0_5, %c0_6] : memref<6x1xf32, #tpu.memory_space<vmem>>, vector<6x1xf32>
    %cst_7 = arith.constant dense<0.000000e+00> : vector<6xf32>
    %16 = vector.multi_reduction <add>, %12, %cst_7 [1] : vector<6x128xf32> to vector<6xf32>
    %17 = vector.shape_cast %16 : vector<6xf32> to vector<6x1xf32>
    %18 = arith.addf %15, %17 : vector<6x1xf32>
    %c0_8 = arith.constant 0 : index
    %c0_9 = arith.constant 0 : index
    %19 = vector.load %arg5[%c0_8, %c0_9] : memref<6x1xf32, #tpu.memory_space<vmem>>, vector<6x1xf32>
    tpu.vector_store %arg5[%c0_8, %c0_9], %18 {strides = array<i32>} : memref<6x1xf32, #tpu.memory_space<vmem>>, vector<6x1xf32>,
    %c0_10 = arith.constant 0 : index
    %c0_11 = arith.constant 0 : index
    %20 = vector.load %arg6[%c0_10, %c0_11] : memref<6x1xf32, #tpu.memory_space<vmem>>, vector<6x1xf32>
    %cst_12 = arith.constant dense<0.000000e+00> : vector<6xf32>
    %21 = vector.multi_reduction <add>, %14, %cst_12 [1] : vector<6x128xf32> to vector<6xf32>
    %22 = vector.shape_cast %21 : vector<6xf32> to vector<6x1xf32>
    %23 = arith.addf %20, %22 : vector<6x1xf32>
    %c0_13 = arith.constant 0 : index
    %c0_14 = arith.constant 0 : index
    %24 = vector.load %arg6[%c0_13, %c0_14] : memref<6x1xf32, #tpu.memory_space<vmem>>, vector<6x1xf32>
    tpu.vector_store %arg6[%c0_13, %c0_14], %23 {strides = array<i32>} : memref<6x1xf32, #tpu.memory_space<vmem>>, vector<6x1xf32>,
    %c0_15 = arith.constant 0 : index
    %c0_16 = arith.constant 0 : index
    %25 = vector.load %arg7[%c0_15, %c0_16] : memref<6x1xf32, #tpu.memory_space<vmem>>, vector<6x1xf32>
    %26 = arith.mulf %12, %14 : vector<6x128xf32>
    %cst_17 = arith.constant dense<0.000000e+00> : vector<6xf32>
    %27 = vector.multi_reduction <add>, %26, %cst_17 [1] : vector<6x128xf32> to vector<6xf32>
    %28 = vector.shape_cast %27 : vector<6xf32> to vector<6x1xf32>
    %29 = arith.addf %25, %28 : vector<6x1xf32>
    %c0_18 = arith.constant 0 : index
    %c0_19 = arith.constant 0 : index
    %30 = vector.load %arg7[%c0_18, %c0_19] : memref<6x1xf32, #tpu.memory_space<vmem>>, vector<6x1xf32>
    tpu.vector_store %arg7[%c0_18, %c0_19], %29 {strides = array<i32>} : memref<6x1xf32, #tpu.memory_space<vmem>>, vector<6x1xf32>,
    %c0_20 = arith.constant 0 : index
    %c0_21 = arith.constant 0 : index
    %31 = vector.load %arg8[%c0_20, %c0_21] : memref<6x1xf32, #tpu.memory_space<vmem>>, vector<6x1xf32>
    %32 = arith.mulf %12, %12 : vector<6x128xf32>
    %cst_22 = arith.constant dense<0.000000e+00> : vector<6xf32>
    %33 = vector.multi_reduction <add>, %32, %cst_22 [1] : vector<6x128xf32> to vector<6xf32>
    %34 = vector.shape_cast %33 : vector<6xf32> to vector<6x1xf32>
    %35 = arith.addf %31, %34 : vector<6x1xf32>
    %c0_23 = arith.constant 0 : index
    %c0_24 = arith.constant 0 : index
    %36 = vector.load %arg8[%c0_23, %c0_24] : memref<6x1xf32, #tpu.memory_space<vmem>>, vector<6x1xf32>
    tpu.vector_store %arg8[%c0_23, %c0_24], %35 {strides = array<i32>} : memref<6x1xf32, #tpu.memory_space<vmem>>, vector<6x1xf32>,
    %c0_25 = arith.constant 0 : index
    %c0_26 = arith.constant 0 : index
    %37 = vector.load %arg9[%c0_25, %c0_26] : memref<6x1xf32, #tpu.memory_space<vmem>>, vector<6x1xf32>
    %38 = arith.mulf %14, %14 : vector<6x128xf32>
    %cst_27 = arith.constant dense<0.000000e+00> : vector<6xf32>
    %39 = vector.multi_reduction <add>, %38, %cst_27 [1] : vector<6x128xf32> to vector<6xf32>
    %40 = vector.shape_cast %39 : vector<6xf32> to vector<6x1xf32>
    %41 = arith.addf %37, %40 : vector<6x1xf32>
    %c0_28 = arith.constant 0 : index
    %c0_29 = arith.constant 0 : index
    %42 = vector.load %arg9[%c0_28, %c0_29] : memref<6x1xf32, #tpu.memory_space<vmem>>, vector<6x1xf32>
    tpu.vector_store %arg9[%c0_28, %c0_29], %41 {strides = array<i32>} : memref<6x1xf32, #tpu.memory_space<vmem>>, vector<6x1xf32>,
    %c2_i32 = arith.constant 2 : i32
    %43 = arith.cmpi eq, %arg1, %c2_i32 : i32
    %44 = arith.extui %43 : i1 to i32
    %c0_i32_30 = arith.constant 0 : i32
    %45 = arith.cmpi ne, %44, %c0_i32_30 : i32
    scf.if %45 {
      %c0_31 = arith.constant 0 : index
      %c0_32 = arith.constant 0 : index
      %46 = vector.load %arg7[%c0_31, %c0_32] : memref<6x1xf32, #tpu.memory_space<vmem>>, vector<6x1xf32>
      %c0_33 = arith.constant 0 : index
      %c0_34 = arith.constant 0 : index
      %47 = vector.load %arg5[%c0_33, %c0_34] : memref<6x1xf32, #tpu.memory_space<vmem>>, vector<6x1xf32>
      %c0_35 = arith.constant 0 : index
      %c0_36 = arith.constant 0 : index
      %48 = vector.load %arg6[%c0_35, %c0_36] : memref<6x1xf32, #tpu.memory_space<vmem>>, vector<6x1xf32>
      %49 = arith.mulf %47, %48 : vector<6x1xf32>
      %cst_37 = arith.constant 0.00333333341 : f32
      %50 = vector.broadcast %cst_37 : f32 to vector<6x1xf32>
      %51 = arith.mulf %49, %50 : vector<6x1xf32>
      %52 = arith.subf %46, %51 : vector<6x1xf32>
      %c0_38 = arith.constant 0 : index
      %c0_39 = arith.constant 0 : index
      %53 = vector.load %arg8[%c0_38, %c0_39] : memref<6x1xf32, #tpu.memory_space<vmem>>, vector<6x1xf32>
      %c0_40 = arith.constant 0 : index
      %c0_41 = arith.constant 0 : index
      %54 = vector.load %arg5[%c0_40, %c0_41] : memref<6x1xf32, #tpu.memory_space<vmem>>, vector<6x1xf32>
      %c0_42 = arith.constant 0 : index
      %c0_43 = arith.constant 0 : index
      %55 = vector.load %arg5[%c0_42, %c0_43] : memref<6x1xf32, #tpu.memory_space<vmem>>, vector<6x1xf32>
      %56 = arith.mulf %54, %55 : vector<6x1xf32>
      %cst_44 = arith.constant 0.00333333341 : f32
      %57 = vector.broadcast %cst_44 : f32 to vector<6x1xf32>
      %58 = arith.mulf %56, %57 : vector<6x1xf32>
      %59 = arith.subf %53, %58 : vector<6x1xf32>
      %c0_45 = arith.constant 0 : index
      %c0_46 = arith.constant 0 : index
      %60 = vector.load %arg9[%c0_45, %c0_46] : memref<6x1xf32, #tpu.memory_space<vmem>>, vector<6x1xf32>
      %c0_47 = arith.constant 0 : index
      %c0_48 = arith.constant 0 : index
      %61 = vector.load %arg6[%c0_47, %c0_48] : memref<6x1xf32, #tpu.memory_space<vmem>>, vector<6x1xf32>
      %c0_49 = arith.constant 0 : index
      %c0_50 = arith.constant 0 : index
      %62 = vector.load %arg6[%c0_49, %c0_50] : memref<6x1xf32, #tpu.memory_space<vmem>>, vector<6x1xf32>
      %63 = arith.mulf %61, %62 : vector<6x1xf32>
      %cst_51 = arith.constant 0.00333333341 : f32
      %64 = vector.broadcast %cst_51 : f32 to vector<6x1xf32>
      %65 = arith.mulf %63, %64 : vector<6x1xf32>
      %66 = arith.subf %60, %65 : vector<6x1xf32>
      %67 = arith.mulf %59, %66 : vector<6x1xf32>
      %cst_52 = arith.constant 0.000000e+00 : f32
      %68 = vector.broadcast %cst_52 : f32 to vector<6x1xf32>
      %69 = arith.cmpf ogt, %67, %68 : vector<6x1xf32>
      %70 = math.rsqrt %67 : vector<6x1xf32>
      %71 = arith.mulf %52, %70 : vector<6x1xf32>
      %cst_53 = arith.constant 0.000000e+00 : f32
      %72 = vector.broadcast %cst_53 : f32 to vector<6x1xf32>
      %73 = arith.select %69, %71, %72 : vector<6x1xi1>, vector<6x1xf32>
      %c0_54 = arith.constant 0 : index
      %c0_55 = arith.constant 0 : index
      %74 = vector.load %arg4[%c0_54, %c0_55] : memref<6x1xf32, #tpu.memory_space<vmem>>, vector<6x1xf32>
      tpu.vector_store %arg4[%c0_54, %c0_55], %73 {strides = array<i32>} : memref<6x1xf32, #tpu.memory_space<vmem>>, vector<6x1xf32>,
    } else {
    }
    return
  }
  func.func @transform_0(%arg0: i32, %arg1: i32) -> (i32, i32) {
    %c0_i32 = arith.constant 0 : i32
    return %arg0, %arg1 : i32, i32
  }
  func.func @transform_1(%arg0: i32, %arg1: i32) -> (i32, i32) {
    %c0_i32 = arith.constant 0 : i32
    return %arg0, %arg1 : i32, i32
  }
  func.func @transform_2(%arg0: i32, %arg1: i32) -> (i32, i32) {
    %c0_i32 = arith.constant 0 : i32
    %c0_i32_0 = arith.constant 0 : i32
    return %arg0, %c0_i32 : i32, i32
  }
}

</mosaic_0001>

<bundles_post_ra>
// kernel: tpu_custom_call.1
= control target key start
LH: loop header
LB: loop body
LE: loop exit
PB: predicated region body
PF: predicated region fallthrough
CT: control target
= control target key end

     0   :  { %7 = vsyncpa [#allocation8], 0  ;;  %s718_s0 = inlined_call_operand.hbm [shape: f32[6,300], index: 0, kind: input, shape index: {}]   ;;  %s719_s1 = inlined_call_operand.hbm [shape: f32[6,300], index: 1, kind: input, shape index: {}]   ;;  %s720_s2 = inlined_call_operand.vmem [shape: f32[6,1], index: 2, kind: output, shape index: {}]  }
   0x1   :  { %9 = vsyncpa [#allocation8 + $0x1], 0 }
   0x2   :  { %10 = vsyncpa [#allocation10], 0 }
   0x3   :  { %12 = vsyncpa [#allocation10 + $0x1], 0  ;;  %s616_s9 = smov 0   ;;  %s618_s10 = smov 0  }
   0x4   :  { %s620_s11 = smov 0   ;;  %s622_s12 = smov 0  }
   0x5   :  { %s624_s13 = smov 0   ;;  %s626_s14 = smov 0  }
   0x6 LB: > { %s405_s15 = sadd.s32 4294967295, %s598_s14   ;;  %s27_s16 = sadd.s32 1, %s594_s13  ;;  %s598_s14 = sphi %s626_s14, %s18_s14   ;;  %s594_s13 = sphi %s624_s13, %s727_s13   ;;  %s590_s12 = sphi %s622_s12, %s726_s12   ;;  %s586_s11 = sphi %s620_s11, %s725_s11   ;;  %s582_s10 = sphi %s618_s10, %s724_s10   ;;  %s578_s9 = sphi %s616_s9, %s723_s9  }
   0x7   : > { %p28_p0 = scmp.ge.s32.totalorder %s27_s16, 3  ;;  %s39_s17 = sadd.s32 1, %s586_s11 }
   0x8   : > { %p46_p1 = scmp.ne.s32.totalorder %s586_s11, %s582_s10  ;;  %p47_p2 = scmp.eq.s32.totalorder %s598_s14, 0 }
   0x9   : > { %s729_s16 = smov (%p28_p0, %s27_s16), 0  ;;  %p52_p4 = scmp.ne.s32.totalorder %s582_s10, %s578_s9 }
   0xa   : > { %p652_p3 = por %p47_p2, %p46_p1  ;;  %s35_s19 = ssub.s32 %s594_s13, %s729_s16 }
   0xb   : > { %p53_p5 = scmp.eq.s32.totalorder %s405_s15, 0  ;;  %p37_p6 = scmp.eq.s32.totalorder %s35_s19, 0 }
   0xc   : > { %p432_p8 = scmp.lt.s32.totalorder %s598_s14, 3  ;;  %s130_s22 = sand.u32 1, %s586_s11  }
   0xd   : > { %p659_p7 = por %p53_p5, %p52_p4  ;;  %s409_s23 = sshll.u32 %s594_s13, 3 }
   0xe   : > { %s665_s21 = scalar_select %p37_p6, %s586_s11, %s39_s17  }
   0xf   : > { %s408_s24 = sshll.u32 %s130_s22, 3  ;;  %s140_s27 = scalar_lea.hbm %s718_s0, %s409_s23 }
  0x10   : > { %s142_s28 = sshll.u32 %s140_s27, 4  ;;  %s134_s29 = scalar_lea.vmem [#allocation7], %s408_s24  ;;  %s143_s28 = int_to_ptr.hbm [resolvable:$true] %s142_s28 }
  0x11   : > { %s144_s30 = sshll.u32 %s134_s29, 4  ;;  %p426_p9 = pnand %p432_p8, %p652_p3  ;;  %s145_s30 = int_to_ptr.vmem [resolvable:$true] %s144_s30 }
  0x12   : > { %p412_p10 = scmp.ge.s32.totalorder %s598_s14, 1  ;;  %p170_p11 = scmp.lt.s32.totalorder %s598_s14, 4 }
  0x13   : > { %s131_s3 = scalar_lea.sflag [#allocation8], %s130_s22  ;;  %s161_s6 = scalar_lea.hbm %s719_s1, %s409_s23 }
  0x14   : > { %428 = dma.hbm_to_vmem [thread:$0]  (!%p426_p9), %s143_s28, 128, %s145_s30, %s131_s3  }
  0x15   : > { %p171_p12 = pnand %p412_p10, %p170_p11  ;;  %s163_s7 = sshll.u32 %s161_s6, 4  ;;  %s164_s7 = int_to_ptr.hbm [resolvable:$true] %s163_s7 }
  0x16   : > { %s155_s8 = scalar_lea.vmem [#allocation9], %s408_s24  ;;  %s152_s15 = scalar_lea.sflag [#allocation10], %s130_s22 }
  0x17   : > { %s165_s9 = sshll.u32 %s155_s8, 4  ;;  %174 = sbr.rel (%p171_p12) target bundleno = 217 (0xd9), region = 28  ;;  %s166_s9 = int_to_ptr.vmem [resolvable:$true] %s165_s9 }
  0x18   : > { %431 = dma.hbm_to_vmem [thread:$0]  (!%p426_p9), %s164_s7, 128, %s166_s9, %s152_s15  }
  0x19   : > { %s176_s17 = sand.u32 (!%p171_p12), 1, %s582_s10  }
  0x1a   : > { %s413_s18 = sshll.u32 (!%p171_p12), %s176_s17, 3  ;;  %s177_s19 = scalar_lea.sflag (!%p171_p12), [#allocation8], %s176_s17 }
  0x1b   : > { %s180_s25 = scalar_lea.vmem (!%p171_p12), [#allocation7], %s413_s18 }
  0x1c   : > { %569 = dma.done.wait (%p659_p7), %s177_s19, 128  }
  0x1d   : > { %571 = vsyncadd (%p659_p7), %s177_s19, 4294967168  ;;  %s187_s23 = scalar_lea.sflag [#allocation10], %s176_s17  ;;  %s190_s24 = scalar_lea.vmem [#allocation9], %s413_s18 }
  0x1e   : > { %573 = dma.done.wait (%p659_p7), %s187_s23, 128  }
  0x1f   : > { %575 = vsyncadd (%p659_p7), %s187_s23, 4294967168  ;;  %p415_p13 = scmp.ne.s32.totalorder %s590_s12, 0 }
  0x21   : > { %223 = sbr.rel (%p415_p13) target bundleno = 44 (0x2c), region = 40 }
  0x26   : > { %vm224_vm0 = vcmask 5120   ;;  %v600_v0 = vmov 0.0  }
  0x27   : > { %225 = vst.msk [vmem:[#allocation2] sm:$0x3f] %vm224_vm0, %v600_v0 }
  0x28   : > { %226 = vst.msk [vmem:[#allocation3] sm:$0x3f] %vm224_vm0, %v600_v0 }
  0x29   : > { %227 = vst.msk [vmem:[#allocation4] sm:$0x3f] %vm224_vm0, %v600_v0 }
  0x2a   : > { %228 = vst.msk [vmem:[#allocation5] sm:$0x3f] %vm224_vm0, %v600_v0 }
  0x2b   : > { %229 = vst.msk [vmem:[#allocation6] sm:$0x3f] %vm224_vm0, %v600_v0 }
  0x2c PF: > { %v232_v1 = vlaneseq  ;;  %s416_s22 = sshll.u32 %s590_s12, 7  ;;  %v230_v4 = vld [vmem:[%s180_s25] sm:$0x3f]  ;;  %v231_v5 = vld [vmem:[%s190_s24] sm:$0x3f]  ;;  %vm241_vm1 = vcmask 1045504  }
  0x2d   : > { %v235_v2 = vstv %s416_s22  ;;  %vm246_vm3 = vcmask 5120   ;;  %p417_p0 = scmp.ne.s32.totalorder %s590_s12, 2 }
  0x2e   : > { %v233_v3 = vand.u32 127, %v232_v1  ;;  %v240_v17 = vld [vmem:[#allocation2] sm:$0x3f] }
  0x2f   : > { %v248_v26 = vld [vmem:[#allocation3] sm:$0x3f] }
  0x30   : > { %v236_v6 = vadd.s32 %v235_v2, %v233_v3  ;;  %v254_v18 = vld [vmem:[#allocation4] sm:$0x3f] }
  0x31   : > { %v261_v27 = vld [vmem:[#allocation5] sm:$0x3f] }
  0x32   : > { %vm237_vm2 = vcmp.lt.s32.totalorder %v236_v6, 300  ;;  %v268_v20 = vld [vmem:[#allocation6] sm:$0x3f] }
  0x33   : > { %v238_v7 = vsel %vm237_vm2, %v230_v4, 0.0  ;;  %v239_v8 = vsel %vm237_vm2, %v231_v5, 0.0 }
  0x34   : > { %v255_v9 = vmul.f32 %v239_v8, %v238_v7  ;;  %v242_v10 = vsel %vm241_vm1, %v238_v7, 0.0  ;;  %v269_v11 = vmul.f32 %v239_v8, %v239_v8  ;;  %v262_v14 = vmul.f32 %v238_v7, %v238_v7 }
  0x35   : > { %243 = vadd.xlane.f32.xlu0 %v242_v10  ;;  %v249_v15 = vsel %vm241_vm1, %v239_v8, 0.0 }
  0x36   : > { %v256_v12 = vsel %vm241_vm1, %v255_v9, 0.0  ;;  %v270_v13 = vsel %vm241_vm1, %v269_v11, 0.0  ;;  %v263_v16 = vsel %vm241_vm1, %v262_v14, 0.0 }
  0x37   : > { %257 = vadd.xlane.f32.xlu1 %v256_v12  ;;  %271 = vadd.xlane.f32.xlu2 %v270_v13 }
  0x3d   : > { %250 = vadd.xlane.f32.xlu0 %v249_v15 }
  0x3f   : > { %264 = vadd.xlane.f32.xlu1 %v263_v16 }
  0xa8   : > { %v244_v19 = vpop.xlane.xlu0 %243 }
  0xa9   : > { %v245_v21 = vadd.f32 %v244_v19, %v240_v17 }
  0xaa   : > { %v258_v22 = vpop.xlane.xlu1 %257  ;;  %v272_v23 = vpop.xlane.xlu2 %271 }
  0xab   : > { %v259_v24 = vadd.f32 %v258_v22, %v254_v18  ;;  %247 = vst.msk [vmem:[#allocation2] sm:$0x3f] %vm246_vm3, %v245_v21  ;;  %v273_v25 = vadd.f32 %v272_v23, %v268_v20 }
  0xad   : > { %260 = vst.msk [vmem:[#allocation4] sm:$0x3f] %vm246_vm3, %v259_v24 }
  0xae   : > { %274 = vst.msk [vmem:[#allocation6] sm:$0x3f] %vm246_vm3, %v273_v25 }
  0xb0   : > { %v251_v28 = vpop.xlane.xlu0 %250 }
  0xb1   : > { %v252_v29 = vadd.f32 %v251_v28, %v248_v26  ;;  %278 = sbr.rel (%p417_p0) target bundleno = 217 (0xd9), region = 44 }
  0xb2   : > { %v265_v30 = vpop.xlane.xlu1 %264 }
  0xb3   : > { %v266_v31 = vadd.f32 %v265_v30, %v261_v27  ;;  %253 = vst.msk [vmem:[#allocation3] sm:$0x3f] %vm246_vm3, %v252_v29 }
  0xb5   : > { %267 = vst.msk [vmem:[#allocation5] sm:$0x3f] %vm246_vm3, %v266_v31 }
  0xb6   : > { %v280_v32 = vld [vmem:[#allocation2] sm:$0x3f]  ;;  %v279_v48 = vld [vmem:[#allocation4] sm:$0x3f] }
  0xb7   : > { %v286_v34 = vmul.f32 %v280_v32, %v280_v32  ;;  %v289_v37 = vld [vmem:[#allocation6] sm:$0x3f] }
  0xb9   : > { %v287_v38 = vmul.f32 0.0033333334, %v286_v34 }
  0xba   : > { %v281_v33 = vld [vmem:[#allocation3] sm:$0x3f] }
  0xbb   : > { %v290_v35 = vmul.f32 %v281_v33, %v281_v33  ;;  %v282_v44 = vmul.f32 %v281_v33, %v280_v32 }
  0xbc   : > { %v285_v36 = vld [vmem:[#allocation5] sm:$0x3f] }
  0xbd   : > { %v291_v39 = vmul.f32 0.0033333334, %v290_v35  ;;  %v288_v40 = vsub.f32 %v285_v36, %v287_v38  ;;  %v283_v47 = vmul.f32 0.0033333334, %v282_v44 }
  0xbf   : > { %v292_v41 = vsub.f32 %v289_v37, %v291_v39  ;;  %v284_v51 = vsub.f32 %v279_v48, %v283_v47 }
  0xc1   : > { %v293_v42 = vmul.f32 %v292_v41, %v288_v40 }
  0xc3   : > { %482 = vrsqrt.f32 %v293_v42  ;;  %vm301_vm4 = vweird.f32 %v293_v42  ;;  %vm294_vm7 = vcmp.gt.f32.partialorder %v293_v42, 0.0 }
  0xc9   : > { %v483_v43 = vpop.eup %482 }
  0xca   : > { %v296_v45 = vmul.f32 %v483_v43, %v293_v42  ;;  %vm302_vm5 = vweird.f32 %v483_v43 }
  0xcb   : > { %vm303_vm6 = vmor %vm301_vm4, %vm302_vm5 }
  0xcc   : > { %v297_v46 = vmul.f32 %v483_v43, %v296_v45 }
  0xce   : > { %v298_v49 = vmul.f32 0.5, %v297_v46 }
  0xd0   : > { %v299_v50 = vsub.f32 1.5, %v298_v49 }
  0xd2   : > { %v300_v52 = vmul.f32 %v483_v43, %v299_v50 }
  0xd4   : > { %v304_v53 = vsel %vm303_vm6, %v483_v43, %v300_v52 }
  0xd5   : > { %v305_v54 = vmul.f32 %v304_v53, %v284_v51 }
  0xd7   : > { %v306_v55 = vsel %vm294_vm7, %v305_v54, 0.0 }
  0xd8   : > { %307 = vst.msk [vmem:[%s720_s2] sm:$0x3f] %vm246_vm3, %v306_v55 }
  0xd9 PF: > { %s18_s14 = sadd.s32 1, %s598_s14   ;;  %s723_s9 = smov %s582_s10 }
  0xda   : > { %p15_p1 = scmp.ge.s32.totalorder %s18_s14, 5   ;;  %s724_s10 = smov %s586_s11 }
  0xdb   : > { %s725_s11 = smov %s665_s21  ;;  %s726_s12 = smov %s594_s13 }
  0xdc   : > { %s727_s13 = smov %s729_s16  ;;  %17 = sbr.rel (!%p15_p1) target bundleno = 6 (0x6), region = 89 }
  0xe1   :  { %327 = vsyncpa [#allocation8], 1 }
  0xe2   :  { %329 = vsyncpa [#allocation8 + $0x1], 1 }
  0xe3   :  { %330 = vsyncpa [#allocation10], 1 }
  0xe4   :  { %332 = vsyncpa [#allocation10 + $0x1], 1 }

</bundles_post_ra>
